<compile_context>
chip_gen: v7x
topology: tpu7x:2x2x1
jax: 0.10.0
libtpu: 0.0.40
codegen_flags: <defaults>
</compile_context>

<pallas_src>
import functools

import jax
import jax.numpy as jnp
from jax.experimental import pallas as pl
from jax.experimental.pallas import tpu as pltpu

Q1 = 0.1
Q9 = 1.0 - Q1

LANE = 128
MAX_TILE_ROWS = 512   # (512, 128) f32 tile = 256 KiB per operand per buffer
NCORES = 2            # leading "parallel" grid axis (both TCs on v7x; harmless
                      # extra serial outer iteration on single-TC v5e/v6e)


def _pinball_kernel(pred_ref, tgt_ref, var_ref, part_ref, acc_ref, *,
                    steps, tile_rows, valid_rows, needs_mask):
    c = pl.program_id(0)
    i = pl.program_id(1)

    @pl.when(i == 0)
    def _():
        acc_ref[...] = jnp.zeros_like(acc_ref)

    # Upcast in-kernel (free VPU work under the DMA); inputs may be bf16.
    o = pred_ref[...].astype(jnp.float32)
    t = tgt_ref[...].astype(jnp.float32)
    v = var_ref[...].astype(jnp.float32)

    d = t - o
    q_10 = d + v
    q_90 = d - v
    loss = (jnp.maximum(Q1 * q_10, (Q1 - 1.0) * q_10)
            + jnp.maximum(Q9 * q_90, (Q9 - 1.0) * q_90))

    if needs_mask:
        # Zero every row whose global row index is past the valid data
        # (covers the ragged last tile and fully-overshooting core-1 tiles).
        row0 = (c * steps + i) * tile_rows
        row_ids = row0 + jax.lax.broadcasted_iota(
            jnp.int32, (tile_rows, LANE), 0)
        loss = jnp.where(row_ids < valid_rows, loss, 0.0)

    # Per-step reduction stays on the VPU: fold the tile into an (8, 128)
    # vector accumulator.  The single cross-lane/sublane reduce happens once,
    # in the wrapper, over the (NCORES, 8, 128) partials.
    acc_ref[...] += loss.reshape(tile_rows // 8, 8, LANE).sum(axis=0)

    @pl.when(i == pl.num_programs(1) - 1)
    def _():
        part_ref[0] = acc_ref[...]


def pinball_loss(output_o, target_o, var_o):
    """Pallas TPU implementation of PinBallLoss.forward. Returns a scalar f32."""
    assert output_o.shape == target_o.shape == var_o.shape
    n = output_o.size
    assert n > 0

    # Pad element count up to a multiple of 128 (lane-dense slab); tiny inputs
    # are padded to one full (8, 128) tile.  Zero padding contributes exactly
    # 0 to the loss sums, so dividing by the true N keeps the mean exact.
    n_pad = max(8 * LANE, -(-n // LANE) * LANE)
    pad = n_pad - n

    def to_slab(x):
        x = jnp.ravel(x)
        if x.dtype != jnp.float32 and x.dtype != jnp.bfloat16:
            x = x.astype(jnp.float32)
        if pad:
            # TODO(synk): in-kernel flat-index tail masking would avoid this
            # extra HBM pass when n is not a multiple of 128.
            x = jnp.pad(x, (0, pad))
        return x.reshape(-1, LANE)

    o2, t2, v2 = to_slab(output_o), to_slab(target_o), to_slab(var_o)
    rows = n_pad // LANE                                   # >= 8

    tile_rows = 8 * min(MAX_TILE_ROWS // 8, rows // 8)     # multiple of 8, <= rows
    total_tiles = -(-rows // tile_rows)
    steps = -(-total_tiles // NCORES)
    covered_rows = NCORES * steps * tile_rows
    needs_mask = covered_rows > rows
    last_tile = total_tiles - 1

    def in_map(c, i):
        # Contiguous split of row-tiles across cores; clamp so no block start
        # is ever out of bounds (overshooting tiles are fully masked in-kernel).
        return (jnp.minimum(c * steps + i, last_tile), 0)

    block = pl.BlockSpec((tile_rows, LANE), in_map)

    kernel = functools.partial(
        _pinball_kernel, steps=steps, tile_rows=tile_rows,
        valid_rows=rows, needs_mask=needs_mask)

    partials = pl.pallas_call(
        kernel,
        out_shape=jax.ShapeDtypeStruct((NCORES, 8, LANE), jnp.float32),
        grid_spec=pltpu.PrefetchScalarGridSpec(
            num_scalar_prefetch=0,
            grid=(NCORES, steps),
            in_specs=[block, block, block],
            out_specs=pl.BlockSpec((1, 8, LANE), lambda c, i: (c, 0, 0)),
            scratch_shapes=[pltpu.VMEM((8, LANE), jnp.float32)],
        ),
        compiler_params=pltpu.CompilerParams(
            dimension_semantics=("parallel", "arbitrary"),
        ),
    )(o2, t2, v2)

    # mean(l10) + mean(l90) == sum(l10 + l90) / N  (same element count).
    return jnp.sum(partials) * (1.0 / n)


def pinball_loss_ref(output_o, target_o, var_o):
    """Pure-JAX reference mirroring the PyTorch module."""
    q_10 = target_o - (output_o - var_o)
    q_90 = target_o - (output_o + var_o)
    loss_10 = jnp.maximum(Q1 * q_10, (Q1 - 1.0) * q_10)
    loss_90 = jnp.maximum(Q9 * q_90, (Q9 - 1.0) * q_90)
    return jnp.mean(loss_10) + jnp.mean(loss_90)


if __name__ == "__main__":
    key = jax.random.PRNGKey(0)
    k1, k2, k3 = jax.random.split(key, 3)

    # Small shapes consistent with the forward (elementwise over prediction /
    # target / variance tensors, e.g. gaze outputs).
    shape = (2, 4, 16, 16)
    output_o = jax.random.normal(k1, shape, dtype=jnp.float32)
    target_o = jax.random.normal(k2, shape, dtype=jnp.float32)
    var_o = jnp.abs(jax.random.normal(k3, shape, dtype=jnp.float32))

    loss = pinball_loss(output_o, target_o, var_o)
    loss = jax.block_until_ready(loss)

    ref = pinball_loss_ref(output_o, target_o, var_o)
    assert jnp.allclose(loss, ref, rtol=1e-5, atol=1e-5), (loss, ref)

    print("KERNEL_OK")
</pallas_src>

<mosaic_0001>
module attributes {stable_mosaic.version = 11 : i64} {
  func.func @_pinball_kernel(%arg0: i32, %arg1: i32, %arg2: memref<16x128xf32, #tpu.memory_space<vmem>>, %arg3: memref<16x128xf32, #tpu.memory_space<vmem>>, %arg4: memref<16x128xf32, #tpu.memory_space<vmem>>, %arg5: memref<1x8x128xf32, #tpu.memory_space<vmem>>, %arg6: memref<8x128xf32, #tpu.memory_space<vmem>>) attributes {dimension_semantics = [#tpu.dimension_semantics<parallel>, #tpu.dimension_semantics<arbitrary>], iteration_bounds = array<i64: 2, 1>, scalar_prefetch = 0 : i64, scratch_operands = 1 : i64, tpu.core_type = #tpu.core_type<tc>, window_params = [{transform_indices = @transform_0, window_bounds = array<i64: 16, 128>}, {transform_indices = @transform_1, window_bounds = array<i64: 16, 128>}, {transform_indices = @transform_2, window_bounds = array<i64: 16, 128>}, {transform_indices = @transform_3, window_bounds = array<i64: 1, 8, 128>}]} {
    %c0_i32 = arith.constant 0 : i32
    %0 = arith.cmpi eq, %arg1, %c0_i32 : i32
    %1 = arith.extui %0 : i1 to i32
    %c0_i32_0 = arith.constant 0 : i32
    %2 = arith.cmpi ne, %1, %c0_i32_0 : i32
    scf.if %2 {
      %cst_18 = arith.constant 0.000000e+00 : f32
      %38 = vector.broadcast %cst_18 : f32 to vector<8x128xf32>
      %c0_19 = arith.constant 0 : index
      %c0_20 = arith.constant 0 : index
      %39 = vector.load %arg6[%c0_19, %c0_20] : memref<8x128xf32, #tpu.memory_space<vmem>>, vector<8x128xf32>
      tpu.vector_store %arg6[%c0_19, %c0_20], %38 {strides = array<i32>} : memref<8x128xf32, #tpu.memory_space<vmem>>, vector<8x128xf32>,
    } else {
    }
    %c0 = arith.constant 0 : index
    %c0_1 = arith.constant 0 : index
    %3 = vector.load %arg2[%c0, %c0_1] : memref<16x128xf32, #tpu.memory_space<vmem>>, vector<16x128xf32>
    %c0_2 = arith.constant 0 : index
    %c0_3 = arith.constant 0 : index
    %4 = vector.load %arg3[%c0_2, %c0_3] : memref<16x128xf32, #tpu.memory_space<vmem>>, vector<16x128xf32>
    %c0_4 = arith.constant 0 : index
    %c0_5 = arith.constant 0 : index
    %5 = vector.load %arg4[%c0_4, %c0_5] : memref<16x128xf32, #tpu.memory_space<vmem>>, vector<16x128xf32>
    %6 = arith.subf %4, %3 : vector<16x128xf32>
    %7 = arith.addf %6, %5 : vector<16x128xf32>
    %8 = arith.subf %6, %5 : vector<16x128xf32>
    %cst = arith.constant 1.000000e-01 : f32
    %9 = vector.broadcast %cst : f32 to vector<16x128xf32>
    %10 = arith.mulf %9, %7 : vector<16x128xf32>
    %cst_6 = arith.constant -0.899999976 : f32
    %11 = vector.broadcast %cst_6 : f32 to vector<16x128xf32>
    %12 = arith.mulf %11, %7 : vector<16x128xf32>
    %13 = arith.maximumf %10, %12 : vector<16x128xf32>
    %cst_7 = arith.constant 0.899999976 : f32
    %14 = vector.broadcast %cst_7 : f32 to vector<16x128xf32>
    %15 = arith.mulf %14, %8 : vector<16x128xf32>
    %cst_8 = arith.constant -1.000000e-01 : f32
    %16 = vector.broadcast %cst_8 : f32 to vector<16x128xf32>
    %17 = arith.mulf %16, %8 : vector<16x128xf32>
    %18 = arith.maximumf %15, %17 : vector<16x128xf32>
    %19 = arith.addf %13, %18 : vector<16x128xf32>
    %c1_i32 = arith.constant 1 : i32
    %20 = arith.muli %arg0, %c1_i32 : i32
    %21 = arith.addi %20, %arg1 : i32
    %c16_i32 = arith.constant 16 : i32
    %22 = arith.muli %21, %c16_i32 : i32
    %23 = tpu.iota {dimensions = array<i32: 0>} : vector<16x128xi32>
    %24 = vector.broadcast %22 : i32 to vector<16x128xi32>
    %25 = arith.addi %24, %23 : vector<16x128xi32>
    %c16_i32_9 = arith.constant 16 : i32
    %26 = vector.broadcast %c16_i32_9 : i32 to vector<16x128xi32>
    %27 = arith.cmpi slt, %25, %26 : vector<16x128xi32>
    %cst_10 = arith.constant 0.000000e+00 : f32
    %28 = vector.broadcast %cst_10 : f32 to vector<16x128xf32>
    %29 = arith.select %27, %19, %28 : vector<16x128xi1>, vector<16x128xf32>
    %c0_11 = arith.constant 0 : index
    %c0_12 = arith.constant 0 : index
    %30 = vector.load %arg6[%c0_11, %c0_12] : memref<8x128xf32, #tpu.memory_space<vmem>>, vector<8x128xf32>
    %31 = vector.shape_cast %29 : vector<16x128xf32> to vector<2x8x128xf32>
    %cst_13 = arith.constant dense<0.000000e+00> : vector<8x128xf32>
    %32 = vector.multi_reduction <add>, %31, %cst_13 [0] : vector<2x8x128xf32> to vector<8x128xf32>
    %33 = arith.addf %30, %32 : vector<8x128xf32>
    %c0_14 = arith.constant 0 : index
    %c0_15 = arith.constant 0 : index
    %34 = vector.load %arg6[%c0_14, %c0_15] : memref<8x128xf32, #tpu.memory_space<vmem>>, vector<8x128xf32>
    tpu.vector_store %arg6[%c0_14, %c0_15], %33 {strides = array<i32>} : memref<8x128xf32, #tpu.memory_space<vmem>>, vector<8x128xf32>,
    %c0_i32_16 = arith.constant 0 : i32
    %35 = arith.cmpi eq, %arg1, %c0_i32_16 : i32
    %36 = arith.extui %35 : i1 to i32
    %c0_i32_17 = arith.constant 0 : i32
    %37 = arith.cmpi ne, %36, %c0_i32_17 : i32
    scf.if %37 {
      %c0_18 = arith.constant 0 : index
      %c0_19 = arith.constant 0 : index
      %38 = vector.load %arg6[%c0_18, %c0_19] : memref<8x128xf32, #tpu.memory_space<vmem>>, vector<8x128xf32>
      %c0_20 = arith.constant 0 : index
      %c0_21 = arith.constant 0 : index
      %c0_22 = arith.constant 0 : index
      %39 = vector.load %arg5[%c0_20, %c0_21, %c0_22] : memref<1x8x128xf32, #tpu.memory_space<vmem>>, vector<1x8x128xf32>
      %40 = vector.shape_cast %39 : vector<1x8x128xf32> to vector<8x128xf32>
      %41 = vector.shape_cast %38 : vector<8x128xf32> to vector<1x8x128xf32>
      tpu.vector_store %arg5[%c0_20, %c0_21, %c0_22], %41 {strides = array<i32>} : memref<1x8x128xf32, #tpu.memory_space<vmem>>, vector<1x8x128xf32>,
    } else {
    }
    return
  }
  func.func @transform_0(%arg0: i32, %arg1: i32) -> (i32, i32) {
    %c1_i32 = arith.constant 1 : i32
    %0 = arith.muli %arg0, %c1_i32 : i32
    %1 = arith.addi %0, %arg1 : i32
    %c0_i32 = arith.constant 0 : i32
    %2 = arith.minsi %1, %c0_i32 : i32
    %c0_i32_0 = arith.constant 0 : i32
    %c0_i32_1 = arith.constant 0 : i32
    return %2, %c0_i32_0 : i32, i32
  }
  func.func @transform_1(%arg0: i32, %arg1: i32) -> (i32, i32) {
    %c1_i32 = arith.constant 1 : i32
    %0 = arith.muli %arg0, %c1_i32 : i32
    %1 = arith.addi %0, %arg1 : i32
    %c0_i32 = arith.constant 0 : i32
    %2 = arith.minsi %1, %c0_i32 : i32
    %c0_i32_0 = arith.constant 0 : i32
    %c0_i32_1 = arith.constant 0 : i32
    return %2, %c0_i32_0 : i32, i32
  }
  func.func @transform_2(%arg0: i32, %arg1: i32) -> (i32, i32) {
    %c1_i32 = arith.constant 1 : i32
    %0 = arith.muli %arg0, %c1_i32 : i32
    %1 = arith.addi %0, %arg1 : i32
    %c0_i32 = arith.constant 0 : i32
    %2 = arith.minsi %1, %c0_i32 : i32
    %c0_i32_0 = arith.constant 0 : i32
    %c0_i32_1 = arith.constant 0 : i32
    return %2, %c0_i32_0 : i32, i32
  }
  func.func @transform_3(%arg0: i32, %arg1: i32) -> (i32, i32, i32) {
    %c0_i32 = arith.constant 0 : i32
    %c0_i32_0 = arith.constant 0 : i32
    %c0_i32_1 = arith.constant 0 : i32
    return %arg0, %c0_i32, %c0_i32_0 : i32, i32, i32
  }
}

</mosaic_0001>

<bundles_post_ra>
// kernel: tpu_custom_call.1
= control target key start
LH: loop header
LB: loop body
LE: loop exit
PB: predicated region body
PF: predicated region fallthrough
CT: control target
= control target key end

     0   :  { %s1105_s0 = inlined_call_operand.hbm [shape: f32[16,128], index: 0, kind: input, shape index: {}]   ;;  %s1106_s1 = inlined_call_operand.hbm [shape: f32[16,128], index: 1, kind: input, shape index: {}]   ;;  %s1107_s2 = inlined_call_operand.hbm [shape: f32[16,128], index: 2, kind: input, shape index: {}]   ;;  %s1108_s3 = inlined_call_operand.hbm [shape: f32[2,8,128], index: 3, kind: output, shape index: {}]  }
   0x1   :  { %1115 = sst [smem:[#allocation16_spill]] %s1106_s1 }
   0x2   :  { %8 = vsyncpa [#allocation4], 0 }
   0x3   :  { %10 = vsyncpa [#allocation4 + $0x1], 0 }
   0x4   :  { %11 = vsyncpa [#allocation7], 0 }
   0x5   :  { %13 = vsyncpa [#allocation7 + $0x1], 0 }
   0x6   :  { %14 = vsyncpa [#allocation5], 0 }
   0x7   :  { %16 = vsyncpa [#allocation5 + $0x1], 0  ;;  %s853_s12 = smov 0   ;;  %s855_s13 = smov 0  }
   0x8   :  { %s857_s14 = smov 0   ;;  %s859_s15 = smov 0  }
   0x9   :  { %s861_s16 = smov 0   ;;  %s863_s17 = smov 0  }
   0xa   :  { %s865_s18 = smov 0   ;;  %s867_s19 = smov 0  }
   0xb LB: > { %1116 = sst [smem:[#allocation13_spill]] %s821_s18  ;;  %s892_s20 = sadd.s32 4294967295, %s825_s19   ;;  %s825_s19 = sphi %s867_s19, %s22_s19   ;;  %s821_s18 = sphi %s865_s18, %s1137_s18   ;;  %s817_s17 = sphi %s863_s17, %s1136_s17   ;;  %s813_s16 = sphi %s861_s16, %s1095_s16   ;;  %s809_s15 = sphi %s859_s15, %s1141_s15   ;;  %s805_s14 = sphi %s857_s14, %s1140_s14   ;;  %s801_s13 = sphi %s855_s13, %s1139_s13   ;;  %s797_s12 = sphi %s853_s12, %s1138_s12  }
   0xc   : > { %s505_s21 = sadd.s32 4294967294, %s825_s19   ;;  %s34_s22 = sadd.s32 1, %s821_s18 }
   0xd   : > { %p36_p0 = scmp.ge.s32.totalorder %s34_s22, 2  ;;  %p794_p1 = scmp.ne.s32.totalorder %s813_s16, 0 }
   0xe   : > { %p55_p2 = scmp.eq.s32.totalorder %s825_s19, 0  ;;  %p60_p3 = scmp.ne.s32.totalorder %s813_s16, %s809_s15 }
   0xf   : > { %s1143_s22 = smov (%p36_p0, %s34_s22), 0  ;;  %p61_p5 = scmp.eq.s32.totalorder %s892_s20, 0 }
  0x10   : > { %1117 = sst [smem:[#allocation14_spill]] %s1143_s22  ;;  %p901_p4 = por %p794_p1, %p55_p2 }
  0x11   : > { %p906_p6 = por %p61_p5, %p60_p3  ;;  %s134_s25 = ssub.s32 %s821_s18, %s1143_s22 }
  0x12   : > { %p135_p7 = scmp.eq.s32.totalorder %s134_s25, 0  ;;  %s137_s26 = sadd.s32 1, %s805_s14 }
  0x13   : > { %s1119_s24 = scalar_select %p906_p6, 1, 0 }
  0x14   : > { %s914_s27 = scalar_select %p135_p7, %s805_s14, %s137_s26  }
  0x15   : > { %p147_p8 = scmp.ne.s32.totalorder %s805_s14, %s801_s13  ;;  %p148_p9 = scmp.eq.s32.totalorder %s892_s20, 1 }
  0x16   : > { %1120 = sst [smem:[#allocation15_spill]] %s914_s27  ;;  %p153_p10 = scmp.ne.s32.totalorder %s801_s13, %s797_s12 }
  0x17   : > { %p154_p11 = scmp.eq.s32.totalorder %s505_s21, 1  ;;  %p921_p12 = por %p148_p9, %p147_p8 }
  0x18   : > { %p552_p1 = scmp.lt.s32.totalorder %s825_s19, 2  ;;  %s198_s4 = sand.u32 1, %s825_s19  }
  0x19   : > { %s1121_s28 = scalar_select %p921_p12, 1, 0 }
  0x1a   : > { %p926_p0 = por %p154_p11, %p153_p10  ;;  %p933_p2 = pnand %p552_p1, %p901_p4 }
  0x1b   : > { %s827_s5 = smov [#allocation6]   ;;  %s941_s7 = scalar_lea.sflag [#allocation7], %s198_s4 }
  0x1c   : > { %s1122_s29 = scalar_select %p926_p0, 1, 0 }
  0x1d   : > { %s1123_s30 = scalar_select %p933_p2, 1, 0 }
  0x1e   : > { %s212_s6 = sshll.u32 %s827_s5, 4  ;;  %s1124_s1 = sld [smem:[#allocation16_spill]]  ;;  %s938_s6 = int_to_ptr.vmem [resolvable:$true] %s212_s6 }
  0x1f   : > { %p951_p5 = pneg %p933_p2 }
  0x24   : > { %s628_s10 = scalar_lea.hbm %s1124_s1, 256 }
  0x25   : > { %p629_p4 = scmp.ne.s32.totalorder %s1124_s1, %s628_s10  ;;  %p635_p9 = scmp.lt.u32.totalorder %s628_s10, %s628_s10 }
  0x26   : > { %p637_p10 = scmp.lt.u32.totalorder %s628_s10, %s1124_s1 }
  0x27   : > { %p631_p7 = pnand %p951_p5, %p629_p4 }
  0x28   : > { %p638_p11 = por %p637_p10, %p635_p9 }
  0x29   : > { %p632_p8 = pneg %p631_p7 }
  0x2b   : > { %p639_p1 = pnand %p638_p11, %p632_p8 }
  0x2d   : > { %642 = shalt.err (!%p639_p1)
}
  0x2e   : > { %s643_s26 = scalar_lea.vmem %s938_s6, 256  ;;  %s650_s4 = scalar_lea.vmem %s938_s6, 512 }
  0x2f   : > { %p644_p13 = scmp.ne.s32.totalorder %s938_s6, %s643_s26  ;;  %p651_p4 = scmp.lt.s32.totalorder %s938_s6, %s938_s6 }
  0x30   : > { %p652_p7 = scmp.lt.s32.totalorder %s650_s4, %s643_s26 }
  0x31   : > { %p646_p3 = pnand %p644_p13, %p951_p5 }
  0x32   : > { %p653_p12 = por %p652_p7, %p651_p4 }
  0x33   : > { %p647_p0 = pneg %p646_p3 }
  0x35   : > { %p654_p6 = pnand %p653_p12, %p647_p0 }
  0x37   : > { %657 = shalt.err (!%p654_p6)
}
  0x38   : > { %s828_s5 = smov 128   ;;  %s829_s8 = smov 8  }
  0x39   : > { %544 = dma.hbm_to_vmem [thread:$0]  (!%p933_p2), %s1124_s1, 256, %s938_s6, %s941_s7, %s828_s5, %s828_s5, %s829_s8  }
  0x3a   : > { %p244_p13 = scmp.lt.s32.totalorder %s825_s19, 3  ;;  %p1126_p3 = scmp.ge.s32.totalorder %s825_s19, 1 }
  0x3b   : > { %s830_s15 = smov [#allocation3]   ;;  %s658_s4 = scalar_lea.hbm %s1105_s0, 256 }
  0x3c   : > { %p980_p12 = pnand %p1126_p3, %p244_p13  ;;  %s188_s23 = sshll.u32 %s830_s15, 4  ;;  %s189_s23 = int_to_ptr.vmem [resolvable:$true] %s188_s23 }
  0x3d   : > { %p659_p6 = scmp.ne.s32.totalorder %s1105_s0, %s658_s4  ;;  %p665_p9 = scmp.lt.u32.totalorder %s658_s4, %s658_s4 }
  0x3e   : > { %s1127_s11 = scalar_select %p980_p12, 1, 0 }
  0x3f   : > { %p661_p0 = pnand %p659_p6, %p951_p5  ;;  %p667_p10 = scmp.lt.u32.totalorder %s658_s4, %s1105_s0 }
  0x41   : > { %p662_p8 = pneg %p661_p0  ;;  %p668_p11 = por %p667_p10, %p665_p9 }
  0x43   : > { %p669_p1 = pnand %p668_p11, %p662_p8 }
  0x45   : > { %672 = shalt.err (!%p669_p1)
}
  0x46   : > { %s673_s10 = scalar_lea.vmem %s189_s23, 256  ;;  %s680_s15 = scalar_lea.vmem %s189_s23, 512 }
  0x47   : > { %p674_p4 = scmp.ne.s32.totalorder %s189_s23, %s673_s10  ;;  %p681_p3 = scmp.lt.s32.totalorder %s189_s23, %s189_s23 }
  0x48   : > { %p682_p12 = scmp.lt.s32.totalorder %s680_s15, %s673_s10 }
  0x49   : > { %p676_p7 = pnand %p674_p4, %p951_p5 }
  0x4a   : > { %p683_p2 = por %p682_p12, %p681_p3 }
  0x4b   : > { %p677_p13 = pneg %p676_p7 }
  0x4d   : > { %p684_p6 = pnand %p683_p2, %p677_p13 }
  0x4f   : > { %687 = shalt.err (!%p684_p6)
}
  0x50   : > { %p1128_p0 = scmp.ne.s32.totalorder %s1123_s30, 0  ;;  %s831_s25 = smov [#allocation8]  }
  0x51   : > { %s236_s26 = sshll.u32 %s831_s25, 4  ;;  %s688_s9 = scalar_lea.hbm %s1107_s2, 256  ;;  %s237_s26 = int_to_ptr.vmem [resolvable:$true] %s236_s26 }
  0x52   : > { %541 = dma.hbm_to_vmem [thread:$0]  (!%p1128_p0), %s1105_s0, 256, %s189_s23, [#allocation4], %s828_s5, %s828_s5, %s829_s8  }
  0x53   : > { %p689_p2 = scmp.ne.s32.totalorder %s1107_s2, %s688_s9  ;;  %p695_p9 = scmp.lt.u32.totalorder %s688_s9, %s688_s9 }
  0x54   : > { %p697_p10 = scmp.lt.u32.totalorder %s688_s9, %s1107_s2 }
  0x55   : > { %p691_p12 = pnand %p689_p2, %p951_p5 }
  0x56   : > { %p698_p11 = por %p697_p10, %p695_p9 }
  0x57   : > { %p692_p8 = pneg %p691_p12 }
  0x59   : > { %p699_p1 = pnand %p698_p11, %p692_p8 }
  0x5b   : > { %702 = shalt.err (!%p699_p1)
}
  0x5c   : > { %s703_s23 = scalar_lea.vmem %s237_s26, 256  ;;  %s710_s18 = scalar_lea.vmem %s237_s26, 512 }
  0x5d   : > { %p704_p4 = scmp.ne.s32.totalorder %s237_s26, %s703_s23  ;;  %p711_p3 = scmp.lt.s32.totalorder %s237_s26, %s237_s26 }
  0x5e   : > { %p712_p6 = scmp.lt.s32.totalorder %s710_s18, %s703_s23 }
  0x5f   : > { %p706_p7 = pnand %p704_p4, %p951_p5 }
  0x60   : > { %p713_p0 = por %p712_p6, %p711_p3 }
  0x61   : > { %p707_p13 = pneg %p706_p7 }
  0x63   : > { %p714_p2 = pnand %p713_p0, %p707_p13 }
  0x65   : > { %717 = shalt.err (!%p714_p2)
}
  0x66   : > { %p1129_p12 = scmp.ne.s32.totalorder %s1123_s30, 0  ;;  %p1130_p8 = scmp.ne.s32.totalorder %s1127_s11, 0 }
  0x67   : > { %s250_s21 = sand.u32 (!%p1130_p8), 1, %s813_s16   ;;  %p1131_p5 = scmp.ne.s32.totalorder (!%p1130_p8), %s1119_s24, 0 }
  0x68   : > { %547 = dma.hbm_to_vmem [thread:$0]  (!%p1129_p12), %s1107_s2, 256, %s237_s26, %s941_s7, %s828_s5, %s828_s5, %s829_s8  }
  0x69   : > { %248 = sbr.rel (%p1130_p8) target bundleno = 147 (0x93), region = 32  ;;  %s518_s22 = sshll.u32 (!%p1130_p8), %s250_s21, 4 }
  0x6a   : > { %s251_s25 = scalar_lea.sflag (!%p1130_p8), [#allocation4], %s250_s21  ;;  %s254_s4 = scalar_lea.vmem (!%p1130_p8), [#allocation3], %s518_s22 }
  0x70   : > { %783 = dma.done.wait (%p1131_p5), %s251_s25, 256  }
  0x71   : > { %785 = vsyncadd (%p1131_p5), %s251_s25, 4294967040  ;;  %s259_s30 = sand.u32 1, %s892_s20   ;;  %s263_s9 = scalar_lea.vmem [#allocation6], %s518_s22 }
  0x72   : > { %s260_s6 = scalar_lea.sflag [#allocation7], %s259_s30 }
  0x73   : > { %787 = dma.done.wait (%p1131_p5), %s260_s6, 512  }
  0x74   : > { %789 = vsyncadd (%p1131_p5), %s260_s6, 4294966784  ;;  %v350_v0 = vlaneseq  ;;  %s522_s7 = sshll.u32 %s817_s17, 4  ;;  %v322_v2 = vld [vmem:[%s254_s4] sm:$0xff]  ;;  %v323_v3 = vld [vmem:[%s254_s4 + $0x8] sm:$0xff]  ;;  %s302_s5 = sand.u32 1, %s801_s13  }
  0x75   : > { %v324_v4 = vld [vmem:[%s263_s9] sm:$0xff]  ;;  %v325_v5 = vld [vmem:[%s263_s9 + $0x8] sm:$0xff]  ;;  %s272_s8 = scalar_lea.vmem [#allocation8], %s518_s22  ;;  %v353_v11 = vstv %s522_s7  ;;  %s1043_s20 = sshll.u32 %s302_s5, 3 }
  0x76   : > { %v351_v1 = vshrl.u32 %v350_v0, 7  ;;  %v326_v6 = vld [vmem:[%s272_s8] sm:$0xff]  ;;  %v327_v7 = vld [vmem:[%s272_s8 + $0x8] sm:$0xff]  ;;  %v328_v8 = vsub.f32 %v324_v4, %v322_v2  ;;  %v329_v9 = vsub.f32 %v325_v5, %v323_v3  ;;  %s304_s24 = scalar_lea.vmem [#allocation9], %s1043_s20  ;;  %s524_s26 = sshll.u32 %s817_s17, 7 }
  0x77   : > { %s383_s11 = sshll.u32 %s304_s24, 4  ;;  %s1052_s23 = scalar_lea.hbm %s1108_s3, %s524_s26  ;;  %s1047_s11 = int_to_ptr.vmem [resolvable:$true] %s383_s11 }
  0x78   : > { %v352_v10 = vadd.s32 8, %v351_v1  ;;  %v330_v12 = vadd.f32 %v328_v8, %v326_v6  ;;  %v332_v13 = vsub.f32 %v328_v8, %v326_v6  ;;  %v331_v14 = vadd.f32 %v329_v9, %v327_v7  ;;  %s370_s18 = scalar_lea.sflag [#allocation5], %s302_s5  ;;  %s718_s1 = scalar_lea.vmem %s1047_s11, 128 }
  0x79   : > { %v333_v15 = vsub.f32 %v329_v9, %v327_v7  ;;  %v354_v19 = vadd.s32 %v353_v11, %v351_v1  ;;  %p719_p0 = scmp.ne.s32.totalorder %s1047_s11, %s718_s1  ;;  %p1132_p9 = scmp.ne.s32.totalorder %s1121_s28, 0 }
  0x7a   : > { %v334_v16 = vmul.f32 0.1, %v330_v12  ;;  %v336_v17 = vmul.f32 -0.9, %v330_v12  ;;  %v340_v18 = vmul.f32 0.9, %v332_v13  ;;  %v355_v23 = vadd.s32 %v353_v11, %v352_v10 }
  0x7b   : > { %v335_v20 = vmul.f32 0.1, %v331_v14  ;;  %v337_v21 = vmul.f32 -0.9, %v331_v14  ;;  %v341_v22 = vmul.f32 0.9, %v333_v15  ;;  %p720_p10 = pnand %p719_p0, %p1132_p9 }
  0x7c   : > { %v338_v24 = vmax.f32 %v334_v16, %v336_v17  ;;  %v342_v25 = vmul.f32 -0.1, %v332_v13  ;;  %v343_v26 = vmul.f32 -0.1, %v333_v15  ;;  %vm356_vm0 = vcmp.lt.s32.totalorder %v354_v19, 16  ;;  %s832_s17 = smov [#allocation9]  }
  0x7d   : > { %v339_v27 = vmax.f32 %v335_v20, %v337_v21  ;;  %vm357_vm1 = vcmp.lt.s32.totalorder %v355_v23, 16  ;;  %p721_p11 = pneg %p720_p10  ;;  %s722_s27 = sshll.u32 %s832_s17, 4  ;;  %s723_s27 = int_to_ptr.vmem [resolvable:$false] %s722_s27 }
  0x7e   : > { %v344_v28 = vmax.f32 %v340_v18, %v342_v25  ;;  %v345_v29 = vmax.f32 %v341_v22, %v343_v26  ;;  %s724_s21 = scalar_lea.vmem %s723_s27, 256  ;;  %p725_p1 = scmp.lt.s32.totalorder %s1047_s11, %s723_s27 }
  0x7f   : > { %p726_p4 = scmp.lt.s32.totalorder %s724_s21, %s718_s1 }
  0x80   : > { %v346_v30 = vadd.f32 %v344_v28, %v338_v24  ;;  %v347_v31 = vadd.f32 %v345_v29, %v339_v27 }
  0x81   : > { %p727_p7 = por %p726_p4, %p725_p1 }
  0x82   : > { %v358_v32 = vsel %vm356_vm0, %v346_v30, 0.0  ;;  %v359_v33 = vsel %vm357_vm1, %v347_v31, 0.0 }
  0x83   : > { %v361_v34 = vadd.f32 %v359_v33, %v358_v32  ;;  %p728_p13 = pnand %p727_p7, %p721_p11 }
  0x85   : > { %368 = vst [vmem:[%s304_s24] sm:$0xff] %v361_v34 }
  0x86   : > { %731 = shalt.err (!%p728_p13)
}
  0x87   : > { %s732_s22 = scalar_lea.hbm %s1052_s23, 128  ;;  %s736_s30 = scalar_lea.hbm %s1108_s3, 256 }
  0x88   : > { %p733_p3 = scmp.ne.s32.totalorder %s1052_s23, %s732_s22  ;;  %p737_p12 = scmp.lt.u32.totalorder %s1052_s23, %s1108_s3 }
  0x89   : > { %p738_p8 = scmp.lt.u32.totalorder %s736_s30, %s732_s22  ;;  %p740_p0 = scmp.lt.u32.totalorder %s732_s22, %s1052_s23 }
  0x8a   : > { %p734_p6 = pnand %p733_p3, %p1132_p9 }
  0x8b   : > { %p739_p5 = por %p738_p8, %p737_p12 }
  0x8c   : > { %p735_p2 = pneg %p734_p6 }
  0x8d   : > { %p741_p10 = por %p740_p0, %p739_p5 }
  0x8f   : > { %p742_p11 = pnand %p741_p10, %p735_p2 }
  0x91   : > { %745 = shalt.err (!%p742_p11)
}
  0x92   : > { %536 = dma.vmem_to_hbm [thread:$0]  (%p1132_p9), %s1047_s11, 128, %s1052_s23, %s370_s18  }
  0x93 PF: > { %s395_s7 = sand.u32 1, %s797_s12   ;;  %p1133_p1 = scmp.ne.s32.totalorder %s1122_s29, 0 }
  0x94   : > { %p1134_p4 = scmp.ge.s32.totalorder %s825_s19, 2  ;;  %s396_s5 = scalar_lea.sflag [#allocation5], %s395_s7 }
  0x96   : > { %p549_p7 = pnand %p1134_p4, %p1133_p1 }
  0x98   : > { %791 = dma.done.wait (!%p549_p7), %s396_s5, 128  }
  0x99   : > { %793 = vsyncadd (!%p549_p7), %s396_s5, 4294967168  ;;  %s22_s19 = sadd.s32 1, %s825_s19   ;;  %s1135_s28 = sld [smem:[#allocation15_spill]] }
  0x9a   : > { %p19_p13 = scmp.ge.s32.totalorder %s22_s19, 4   ;;  %s1136_s17 = sld [smem:[#allocation13_spill]] }
  0x9b   : > { %s1137_s18 = sld [smem:[#allocation14_spill]]  ;;  %s1138_s12 = smov %s801_s13 }
  0x9c   : > { %s1139_s13 = smov %s805_s14  ;;  %s1141_s15 = smov %s813_s16 }
  0x9d   : > { %s1095_s16 = smov 0   ;;  %21 = sbr.rel (!%p19_p13) target bundleno = 11 (0xb), region = 109 }
  0x9f   : > { %s1140_s14 = smov %s1135_s28 }
  0xa4   :  { %401 = vsyncpa [#allocation4], 1 }
  0xa5   :  { %403 = vsyncpa [#allocation4 + $0x1], 1 }
  0xa6   :  { %404 = vsyncpa [#allocation7], 1 }
  0xa7   :  { %406 = vsyncpa [#allocation7 + $0x1], 1 }
  0xa8   :  { %407 = vsyncpa [#allocation5], 1 }
  0xa9   :  { %409 = vsyncpa [#allocation5 + $0x1], 1 }

</bundles_post_ra>
